<compile_context>
chip_gen: v7x
topology: tpu7x:2x2x1
jax: 0.10.0
libtpu: 0.0.40
codegen_flags: <defaults>
</compile_context>

<pallas_src>
import functools

import jax
import jax.numpy as jnp
from jax.experimental import pallas as pl
from jax.experimental.pallas import tpu as pltpu


# ----------------------------- Pallas kernel ------------------------------- #

def yolonet_kernel(x_ref, w1_ref, w2_ref, w3_ref, wh_ref, out_ref, *, seq_len):
    """Fused 3x(Conv1d k=3 + ReLU) backbone + fused cls/bbox heads.

    x_ref  : (M, Cin) f32, M = (#batch elems in this block) * seq_len
    w*_ref : (3*Cin_l + 1, Cout_l) bf16 -- rows = 3 conv taps stacked over Cin,
             last row = bias (consumed via a ones column appended to the input)
    wh_ref : (C3 + 1, P) bf16 -- fused [cls | bbox | zero-pad] head, P % 128 == 0
    out_ref: (M, P) f32 lane-dense combined head output
    """
    m = x_ref.shape[0]
    # Hoisted once per invocation (all layers share the same masks): per-row
    # position within its sequence and the two edge masks.  Masking also at
    # batch boundaries keeps batches isolated in the flattened layout.
    row = jax.lax.broadcasted_iota(jnp.int32, (m, 1), 0)
    pos = row % seq_len
    is_first = pos == 0                 # row l has no valid l-1 neighbour
    is_last = pos == seq_len - 1        # row l has no valid l+1 neighbour
    ones = jnp.ones((m, 1), jnp.float32)

    def conv3_relu(x, w_ref):
        # y[l] = relu(x[l-1]@W0 + x[l]@W1 + x[l+1]@W2 + b) folded into ONE dot:
        # concat shifted copies (+ ones column for the bias row) along channels
        # and multiply by the (3*Cin+1, Cout) blob.  bf16 operands, f32 accum.
        x_m1 = jnp.where(is_first, 0.0, pltpu.roll(x, shift=1, axis=0))     # x[l-1]
        x_p1 = jnp.where(is_last, 0.0, pltpu.roll(x, shift=m - 1, axis=0))  # x[l+1]
        x_cat = jnp.concatenate([x_m1, x, x_p1, ones], axis=-1)
        y = jnp.dot(x_cat.astype(jnp.bfloat16), w_ref[...],
                    preferred_element_type=jnp.float32)
        return jnp.maximum(y, 0.0)

    h = conv3_relu(x_ref[...], w1_ref)     # (M, out/8)
    h = conv3_relu(h, w2_ref)              # (M, out/2)
    h = conv3_relu(h, w3_ref)              # (M, out)
    # RoIHeads 1x1-conv heads (cls | bbox) fused into one lane-dense matmul,
    # bias folded in via the ones column.
    h_cat = jnp.concatenate([h, ones], axis=-1).astype(jnp.bfloat16)
    out_ref[...] = jnp.dot(h_cat, wh_ref[...], preferred_element_type=jnp.float32)


# ------------------------------- wrapper ----------------------------------- #

def _const_spec(shape):
    nd = len(shape)
    return pl.BlockSpec(shape, lambda i, _nd=nd: (0,) * _nd)


def make_anchors(image_len, feat_len, batch, sizes, aspect_ratios):
    """AnchorsGenerator.forward (glue, plain JAX)."""
    scales = jnp.asarray(sizes, jnp.float32)
    ars = jnp.asarray(aspect_ratios, jnp.float32)
    ws = (ars[:, None] * scales[None, :]).reshape(-1)
    cell_anchors = jnp.round(jnp.stack([-ws, ws], axis=1) / 2.0)        # (A, 2)
    stride = jnp.asarray(int(image_len / feat_len), jnp.float32)
    shift_x = jnp.arange(feat_len, dtype=jnp.float32) * stride
    shifts = jnp.stack([shift_x, shift_x], axis=1)                      # (L, 2)
    anchors = (shifts[:, None, :] + cell_anchors[None, :, :]).reshape(-1, 2)
    return jnp.broadcast_to(anchors[None], (batch, anchors.shape[0], 2))


def yolonet_forward(images_ncl, kernel_params, *, num_anchors, num_classes,
                    sizes, aspect_ratios, grid_blocks=1):
    """Inference forward: returns (class_logits, box_regression, pred_scores, proposals)."""
    B, Cin, L = images_ncl.shape
    assert B % grid_blocks == 0
    # NCL -> (B*L, Cin).  TODO(synk): at realistic sizes fuse this transpose into
    # the kernel (in-kernel transpose of (Cin, L_tile) blocks) to avoid an extra
    # HBM pass; negligible at these toy shapes.
    x = jnp.transpose(images_ncl, (0, 2, 1)).astype(jnp.float32).reshape(B * L, Cin)
    w1a, w2a, w3a, wha = kernel_params
    P = wha.shape[-1]                        # padded (lane-dense) head width
    n_cls = num_anchors * (1 + num_classes)
    n_reg = num_anchors * 2 * (1 + num_classes)
    rows = (B // grid_blocks) * L            # rows (whole batch elems) per grid step

    out = pl.pallas_call(
        functools.partial(yolonet_kernel, seq_len=L),
        # Batch fully collapsed into one step (per-step overhead dominates at
        # these sizes).  On v7x with larger B, pass grid_blocks=2 so both
        # TensorCores get a "parallel" step.
        grid=(grid_blocks,),
        in_specs=[
            pl.BlockSpec((rows, Cin), lambda i: (i, 0)),
            _const_spec(w1a.shape), _const_spec(w2a.shape),
            _const_spec(w3a.shape), _const_spec(wha.shape),
        ],
        out_specs=pl.BlockSpec((rows, P), lambda i: (i, 0)),
        out_shape=jax.ShapeDtypeStruct((B * L, P), jnp.float32),
        compiler_params=pltpu.CompilerParams(dimension_semantics=("parallel",)),
    )(x, w1a, w2a, w3a, wha)

    A = num_anchors
    C = 1 + num_classes
    # concat_box_prediction_layers + cat_res: (B, L, A*C) -> (B*L*A, C); in the
    # channels-last flattened layout this is a pure reshape of the lane-dense
    # kernel output (padding columns are sliced off for free by XLA).
    class_logits = out[:, :n_cls].reshape(B * L * A, C)
    box_regression = out[:, n_cls:n_cls + n_reg].reshape(B * L * A, 2 * C)
    # postprocess_detections step (2): softmax over classes.
    pred_scores = jax.nn.softmax(class_logits, axis=-1)
    # AnchorsGenerator -> proposals (list of identical (A*L, 2) arrays, stacked).
    proposals = make_anchors(images_ncl.shape[-1], L, B, sizes, aspect_ratios)
    # TODO(synk): box_coder.decode / clip_boxes_to_image / remove_small_boxes /
    # batched_nms / top-k of RoIHeads.postprocess_detections rely on helpers not
    # provided (BoxCoder, batched_nms, ...) and on data-dependent output shapes;
    # they are left out of the kernel.
    return class_logits, box_regression, pred_scores, proposals


# ------------------------- parameter construction -------------------------- #

def init_torch_layout_params(key, in_channels, out_channels, num_anchors, num_classes):
    """Deterministic synthetic params in PyTorch layout (Cout, Cin, K)."""
    C1, C2, C3 = out_channels // 8, out_channels // 2, out_channels
    n_cls = num_anchors * (1 + num_classes)
    n_reg = num_anchors * 2 * (1 + num_classes)
    shapes = [
        (C1, in_channels, 3), (C1,),
        (C2, C1, 3), (C2,),
        (C3, C2, 3), (C3,),
        (n_cls, C3, 1), (n_cls,),
        (n_reg, C3, 1), (n_reg,),
    ]
    keys = jax.random.split(key, len(shapes))
    return [0.1 * jax.random.normal(k, s, jnp.float32) for k, s in zip(keys, shapes)]


def to_kernel_layout(pt, lane_pad=128):
    """Pack the 10 PyTorch-layout params into 4 bf16 blobs consumed by the kernel.

    Conv layer  -> (3*Cin + 1, Cout): rows [tap0*Cin | tap1*Cin | tap2*Cin | bias].
    Fused heads -> (C3 + 1, P)      : columns [cls | bbox | zero-pad to P%128==0],
                                      last row = bias.
    """
    (w1t, b1, w2t, b2, w3t, b3, wct, bc, wbt, bb) = pt

    def conv_blob(w, b):
        w2d = jnp.transpose(w, (2, 1, 0)).reshape(-1, w.shape[0])   # (K*Cin, Cout)
        return jnp.concatenate([w2d, b[None, :]], axis=0).astype(jnp.bfloat16)

    wc = jnp.transpose(wct, (2, 1, 0))[0]                           # (C3, n_cls)
    wb = jnp.transpose(wbt, (2, 1, 0))[0]                           # (C3, n_reg)
    wh = jnp.concatenate([wc, wb], axis=1)
    bh = jnp.concatenate([bc, bb], axis=0)
    n_out = wh.shape[1]
    P = ((n_out + lane_pad - 1) // lane_pad) * lane_pad
    wh = jnp.pad(wh, ((0, 0), (0, P - n_out)))
    bh = jnp.pad(bh, (0, P - n_out))
    wh_blob = jnp.concatenate([wh, bh[None, :]], axis=0).astype(jnp.bfloat16)
    return (conv_blob(w1t, b1), conv_blob(w2t, b2), conv_blob(w3t, b3), wh_blob)


# ----------------------------- plain-JAX ref -------------------------------- #

def ref_forward(x_ncl, pt, num_anchors, num_classes):
    (w1t, b1, w2t, b2, w3t, b3, wct, bc, wbt, bb) = pt

    def conv1d(x, w, b, pad):
        y = jax.lax.conv_general_dilated(
            x, w, window_strides=(1,), padding=[(pad, pad)],
            dimension_numbers=('NCH', 'OIH', 'NCH'))
        return y + b[None, :, None]

    h = jax.nn.relu(conv1d(x_ncl, w1t, b1, 1))
    h = jax.nn.relu(conv1d(h, w2t, b2, 1))
    h = jax.nn.relu(conv1d(h, w3t, b3, 1))
    cls = conv1d(h, wct, bc, 0)                                  # (B, A*C, L)
    reg = conv1d(h, wbt, bb, 0)                                  # (B, A*2C, L)
    B, _, L = x_ncl.shape
    A, C = num_anchors, 1 + num_classes

    def permute_and_flatten(layer, cc):
        layer = layer.reshape(B, A, cc, L)
        layer = jnp.transpose(layer, (0, 3, 1, 2))
        return layer.reshape(B, -1, cc)

    return (permute_and_flatten(cls, C).reshape(-1, C),
            permute_and_flatten(reg, 2 * C).reshape(-1, 2 * C))


# --------------------------------- main ------------------------------------ #

if __name__ == "__main__":
    # Small shapes consistent with the module.
    B = 2
    in_channels = 4
    out_channels = 32          # must be divisible by 8 (out_channels // 8)
    length = 16
    num_classes = 3
    sizes = (2, 4, 8, 10, 12, 16, 32)
    aspect_ratios = (1.0,)
    num_anchors = len(sizes) * len(aspect_ratios)   # 7

    key = jax.random.PRNGKey(0)
    k_img, k_par = jax.random.split(key)
    images = jax.random.normal(k_img, (B, in_channels, length), jnp.float32)  # NCL

    torch_params = init_torch_layout_params(k_par, in_channels, out_channels,
                                            num_anchors, num_classes)
    kernel_params = to_kernel_layout(torch_params)

    cls, reg, scores, proposals = yolonet_forward(
        images, kernel_params,
        num_anchors=num_anchors, num_classes=num_classes,
        sizes=sizes, aspect_ratios=aspect_ratios)
    jax.block_until_ready((cls, reg, scores, proposals))

    # Sanity check against a plain-JAX f32 reference of the same forward pass.
    # Tolerance is loosened because matmul operands are bf16 (f32 accumulation).
    cls_ref, reg_ref = ref_forward(images, torch_params, num_anchors, num_classes)
    assert jnp.allclose(cls, cls_ref, rtol=5e-2, atol=2e-2), "cls mismatch"
    assert jnp.allclose(reg, reg_ref, rtol=5e-2, atol=2e-2), "reg mismatch"
    assert cls.shape == (B * length * num_anchors, 1 + num_classes)
    assert reg.shape == (B * length * num_anchors, 2 * (1 + num_classes))
    assert proposals.shape == (B, length * num_anchors, 2)

    print("KERNEL_OK")
</pallas_src>

<mosaic_0001>
module attributes {stable_mosaic.version = 11 : i64} {
  func.func @yolonet_kernel(%arg0: i32, %arg1: memref<32x4xf32, #tpu.memory_space<vmem>>, %arg2: memref<13x4xbf16, #tpu.memory_space<vmem>>, %arg3: memref<13x16xbf16, #tpu.memory_space<vmem>>, %arg4: memref<49x32xbf16, #tpu.memory_space<vmem>>, %arg5: memref<33x128xbf16, #tpu.memory_space<vmem>>, %arg6: memref<32x128xf32, #tpu.memory_space<vmem>>) attributes {dimension_semantics = [#tpu.dimension_semantics<parallel>], iteration_bounds = array<i64: 1>, scalar_prefetch = 0 : i64, scratch_operands = 0 : i64, tpu.core_type = #tpu.core_type<tc>, window_params = [{transform_indices = @transform_0, window_bounds = array<i64: 32, 4>}, {pipeline_mode = #tpu.pipeline_mode<synchronous>, transform_indices = @transform_1, window_bounds = array<i64: 13, 4>}, {pipeline_mode = #tpu.pipeline_mode<synchronous>, transform_indices = @transform_2, window_bounds = array<i64: 13, 16>}, {pipeline_mode = #tpu.pipeline_mode<synchronous>, transform_indices = @transform_3, window_bounds = array<i64: 49, 32>}, {pipeline_mode = #tpu.pipeline_mode<synchronous>, transform_indices = @transform_4, window_bounds = array<i64: 33, 128>}, {transform_indices = @transform_5, window_bounds = array<i64: 32, 128>}]} {
    %0 = tpu.iota {dimensions = array<i32: 0>} : vector<32x1xi32>
    %c16_i32 = arith.constant 16 : i32
    %c0_i32 = arith.constant 0 : i32
    %1 = arith.cmpi eq, %c16_i32, %c0_i32 : i32
    %c1_i32 = arith.constant 1 : i32
    %2 = arith.select %1, %c1_i32, %c16_i32 : i32
    %3 = vector.broadcast %2 : i32 to vector<32x1xi32>
    %4 = arith.remsi %0, %3 : vector<32x1xi32>
    %c0_i32_0 = arith.constant 0 : i32
    %5 = vector.broadcast %c0_i32_0 : i32 to vector<32x1xi32>
    %6 = arith.cmpi ne, %4, %5 : vector<32x1xi32>
    %c0_i32_1 = arith.constant 0 : i32
    %7 = vector.broadcast %c0_i32_1 : i32 to vector<32x1xi32>
    %8 = arith.cmpi slt, %4, %7 : vector<32x1xi32>
    %c0_i32_2 = arith.constant 0 : i32
    %9 = arith.cmpi slt, %2, %c0_i32_2 : i32
    %10 = vector.broadcast %9 : i1 to vector<32x1xi1>
    %11 = vector.broadcast %10 : vector<32x1xi1> to vector<32x1xi1>
    %12 = arith.xori %8, %11 : vector<32x1xi1>
    %13 = arith.andi %12, %6 : vector<32x1xi1>
    %14 = vector.broadcast %2 : i32 to vector<32x1xi32>
    %15 = arith.addi %4, %14 : vector<32x1xi32>
    %16 = arith.select %13, %15, %4 : vector<32x1xi1>, vector<32x1xi32>
    %c0_i32_3 = arith.constant 0 : i32
    %17 = vector.broadcast %c0_i32_3 : i32 to vector<32x1xi32>
    %18 = arith.cmpi eq, %16, %17 : vector<32x1xi32>
    %c15_i32 = arith.constant 15 : i32
    %19 = vector.broadcast %c15_i32 : i32 to vector<32x1xi32>
    %20 = arith.cmpi eq, %16, %19 : vector<32x1xi32>
    %cst = arith.constant 1.000000e+00 : f32
    %21 = vector.broadcast %cst : f32 to vector<32x1xf32>
    %c0 = arith.constant 0 : index
    %c0_4 = arith.constant 0 : index
    %22 = vector.load %arg1[%c0, %c0_4] : memref<32x4xf32, #tpu.memory_space<vmem>>, vector<32x4xf32>
    %c1_i32_5 = arith.constant 1 : i32
    %23 = tpu.dynamic_rotate %22 by %c1_i32_5 dim 0 : vector<32x4xf32>, i32 -> vector<32x4xf32>
    %cst_6 = arith.constant 0.000000e+00 : f32
    %24 = vector.shape_cast %18 : vector<32x1xi1> to vector<32x1xi1>
    %25 = vector.broadcast %24 : vector<32x1xi1> to vector<32x4xi1>
    %26 = vector.broadcast %cst_6 : f32 to vector<32x4xf32>
    %27 = arith.select %25, %26, %23 : vector<32x4xi1>, vector<32x4xf32>
    %c31_i32 = arith.constant 31 : i32
    %28 = tpu.dynamic_rotate %22 by %c31_i32 dim 0 : vector<32x4xf32>, i32 -> vector<32x4xf32>
    %cst_7 = arith.constant 0.000000e+00 : f32
    %29 = vector.shape_cast %20 : vector<32x1xi1> to vector<32x1xi1>
    %30 = vector.broadcast %29 : vector<32x1xi1> to vector<32x4xi1>
    %31 = vector.broadcast %cst_7 : f32 to vector<32x4xf32>
    %32 = arith.select %30, %31, %28 : vector<32x4xi1>, vector<32x4xf32>
    %33 = tpu.concatenate %27, %22, %32, %21 in 1 : vector<32x4xf32>, vector<32x4xf32>, vector<32x4xf32>, vector<32x1xf32> -> vector<32x13xf32>
    %34 = arith.truncf %33 : vector<32x13xf32> to vector<32x13xbf16>
    %c0_8 = arith.constant 0 : index
    %c0_9 = arith.constant 0 : index
    %35 = vector.load %arg2[%c0_8, %c0_9] : memref<13x4xbf16, #tpu.memory_space<vmem>>, vector<13x4xbf16>
    %cst_10 = arith.constant dense<0.000000e+00> : vector<32x4xf32>
    %36 = tpu.matmul %34, %35, %cst_10 {dimension_numbers = #tpu.dot_dimension_numbers<[1], [0], [0], [1], [0, 0, 1, 1], [], []>} : vector<32x13xbf16>, vector<13x4xbf16>, vector<32x4xf32> -> vector<32x4xf32>
    %cst_11 = arith.constant 0.000000e+00 : f32
    %37 = vector.broadcast %cst_11 : f32 to vector<32x4xf32>
    %38 = arith.maximumf %36, %37 : vector<32x4xf32>
    %c1_i32_12 = arith.constant 1 : i32
    %39 = tpu.dynamic_rotate %38 by %c1_i32_12 dim 0 : vector<32x4xf32>, i32 -> vector<32x4xf32>
    %cst_13 = arith.constant 0.000000e+00 : f32
    %40 = vector.shape_cast %18 : vector<32x1xi1> to vector<32x1xi1>
    %41 = vector.broadcast %40 : vector<32x1xi1> to vector<32x4xi1>
    %42 = vector.broadcast %cst_13 : f32 to vector<32x4xf32>
    %43 = arith.select %41, %42, %39 : vector<32x4xi1>, vector<32x4xf32>
    %c31_i32_14 = arith.constant 31 : i32
    %44 = tpu.dynamic_rotate %38 by %c31_i32_14 dim 0 : vector<32x4xf32>, i32 -> vector<32x4xf32>
    %cst_15 = arith.constant 0.000000e+00 : f32
    %45 = vector.shape_cast %20 : vector<32x1xi1> to vector<32x1xi1>
    %46 = vector.broadcast %45 : vector<32x1xi1> to vector<32x4xi1>
    %47 = vector.broadcast %cst_15 : f32 to vector<32x4xf32>
    %48 = arith.select %46, %47, %44 : vector<32x4xi1>, vector<32x4xf32>
    %49 = tpu.concatenate %43, %38, %48, %21 in 1 : vector<32x4xf32>, vector<32x4xf32>, vector<32x4xf32>, vector<32x1xf32> -> vector<32x13xf32>
    %50 = arith.truncf %49 : vector<32x13xf32> to vector<32x13xbf16>
    %c0_16 = arith.constant 0 : index
    %c0_17 = arith.constant 0 : index
    %51 = vector.load %arg3[%c0_16, %c0_17] : memref<13x16xbf16, #tpu.memory_space<vmem>>, vector<13x16xbf16>
    %cst_18 = arith.constant dense<0.000000e+00> : vector<32x16xf32>
    %52 = tpu.matmul %50, %51, %cst_18 {dimension_numbers = #tpu.dot_dimension_numbers<[1], [0], [0], [1], [0, 0, 1, 1], [], []>} : vector<32x13xbf16>, vector<13x16xbf16>, vector<32x16xf32> -> vector<32x16xf32>
    %cst_19 = arith.constant 0.000000e+00 : f32
    %53 = vector.broadcast %cst_19 : f32 to vector<32x16xf32>
    %54 = arith.maximumf %52, %53 : vector<32x16xf32>
    %c1_i32_20 = arith.constant 1 : i32
    %55 = tpu.dynamic_rotate %54 by %c1_i32_20 dim 0 : vector<32x16xf32>, i32 -> vector<32x16xf32>
    %cst_21 = arith.constant 0.000000e+00 : f32
    %56 = vector.shape_cast %18 : vector<32x1xi1> to vector<32x1xi1>
    %57 = vector.broadcast %56 : vector<32x1xi1> to vector<32x16xi1>
    %58 = vector.broadcast %cst_21 : f32 to vector<32x16xf32>
    %59 = arith.select %57, %58, %55 : vector<32x16xi1>, vector<32x16xf32>
    %c31_i32_22 = arith.constant 31 : i32
    %60 = tpu.dynamic_rotate %54 by %c31_i32_22 dim 0 : vector<32x16xf32>, i32 -> vector<32x16xf32>
    %cst_23 = arith.constant 0.000000e+00 : f32
    %61 = vector.shape_cast %20 : vector<32x1xi1> to vector<32x1xi1>
    %62 = vector.broadcast %61 : vector<32x1xi1> to vector<32x16xi1>
    %63 = vector.broadcast %cst_23 : f32 to vector<32x16xf32>
    %64 = arith.select %62, %63, %60 : vector<32x16xi1>, vector<32x16xf32>
    %65 = tpu.concatenate %59, %54, %64, %21 in 1 : vector<32x16xf32>, vector<32x16xf32>, vector<32x16xf32>, vector<32x1xf32> -> vector<32x49xf32>
    %66 = arith.truncf %65 : vector<32x49xf32> to vector<32x49xbf16>
    %c0_24 = arith.constant 0 : index
    %c0_25 = arith.constant 0 : index
    %67 = vector.load %arg4[%c0_24, %c0_25] : memref<49x32xbf16, #tpu.memory_space<vmem>>, vector<49x32xbf16>
    %cst_26 = arith.constant dense<0.000000e+00> : vector<32x32xf32>
    %68 = tpu.matmul %66, %67, %cst_26 {dimension_numbers = #tpu.dot_dimension_numbers<[1], [0], [0], [1], [0, 0, 1, 1], [], []>} : vector<32x49xbf16>, vector<49x32xbf16>, vector<32x32xf32> -> vector<32x32xf32>
    %cst_27 = arith.constant 0.000000e+00 : f32
    %69 = vector.broadcast %cst_27 : f32 to vector<32x32xf32>
    %70 = arith.maximumf %68, %69 : vector<32x32xf32>
    %71 = tpu.concatenate %70, %21 in 1 : vector<32x32xf32>, vector<32x1xf32> -> vector<32x33xf32>
    %72 = arith.truncf %71 : vector<32x33xf32> to vector<32x33xbf16>
    %c0_28 = arith.constant 0 : index
    %c0_29 = arith.constant 0 : index
    %73 = vector.load %arg5[%c0_28, %c0_29] : memref<33x128xbf16, #tpu.memory_space<vmem>>, vector<33x128xbf16>
    %cst_30 = arith.constant dense<0.000000e+00> : vector<32x128xf32>
    %74 = tpu.matmul %72, %73, %cst_30 {dimension_numbers = #tpu.dot_dimension_numbers<[1], [0], [0], [1], [0, 0, 1, 1], [], []>} : vector<32x33xbf16>, vector<33x128xbf16>, vector<32x128xf32> -> vector<32x128xf32>
    %c0_31 = arith.constant 0 : index
    %c0_32 = arith.constant 0 : index
    %75 = vector.load %arg6[%c0_31, %c0_32] : memref<32x128xf32, #tpu.memory_space<vmem>>, vector<32x128xf32>
    tpu.vector_store %arg6[%c0_31, %c0_32], %74 {strides = array<i32>} : memref<32x128xf32, #tpu.memory_space<vmem>>, vector<32x128xf32>,
    return
  }
  func.func @transform_0(%arg0: i32) -> (i32, i32) {
    %c0_i32 = arith.constant 0 : i32
    %c0_i32_0 = arith.constant 0 : i32
    return %arg0, %c0_i32 : i32, i32
  }
  func.func @transform_1(%arg0: i32) -> (i32, i32) {
    %c0_i32 = arith.constant 0 : i32
    %c0_i32_0 = arith.constant 0 : i32
    %c0_i32_1 = arith.constant 0 : i32
    return %c0_i32, %c0_i32_0 : i32, i32
  }
  func.func @transform_2(%arg0: i32) -> (i32, i32) {
    %c0_i32 = arith.constant 0 : i32
    %c0_i32_0 = arith.constant 0 : i32
    %c0_i32_1 = arith.constant 0 : i32
    return %c0_i32, %c0_i32_0 : i32, i32
  }
  func.func @transform_3(%arg0: i32) -> (i32, i32) {
    %c0_i32 = arith.constant 0 : i32
    %c0_i32_0 = arith.constant 0 : i32
    %c0_i32_1 = arith.constant 0 : i32
    return %c0_i32, %c0_i32_0 : i32, i32
  }
  func.func @transform_4(%arg0: i32) -> (i32, i32) {
    %c0_i32 = arith.constant 0 : i32
    %c0_i32_0 = arith.constant 0 : i32
    %c0_i32_1 = arith.constant 0 : i32
    return %c0_i32, %c0_i32_0 : i32, i32
  }
  func.func @transform_5(%arg0: i32) -> (i32, i32) {
    %c0_i32 = arith.constant 0 : i32
    %c0_i32_0 = arith.constant 0 : i32
    return %arg0, %c0_i32 : i32, i32
  }
}

</mosaic_0001>

<bundles_post_ra>
// kernel: tpu_custom_call.1
= control target key start
LH: loop header
LB: loop body
LE: loop exit
PB: predicated region body
PF: predicated region fallthrough
CT: control target
= control target key end

     0   :  { %v22_v2 = vlaneseq  ;;  %s832_s26 = smov 4   ;;  %vm192_vm2 = vcmask 1045504   ;;  %vm193_vm3 = vcmask 1046528   ;;  %v833_v31 = vmov 65535   ;;  %s1074_s0 = inlined_call_operand.vmem [shape: f32[32,4], index: 0, kind: input, shape index: {}]   ;;  %s1075_s1 = inlined_call_operand.vmem [shape: bf16[13,4], index: 1, kind: input, shape index: {}]   ;;  %s1076_s2 = inlined_call_operand.vmem [shape: bf16[13,16], index: 2, kind: input, shape index: {}]   ;;  %s1077_s3 = inlined_call_operand.vmem [shape: bf16[49,32], index: 3, kind: input, shape index: {}]   ;;  %s1078_s4 = inlined_call_operand.vmem [shape: bf16[33,128], index: 4, kind: input, shape index: {}]   ;;  %s1079_s5 = inlined_call_operand.hbm [shape: f32[32,128], index: 5, kind: output, shape index: {}]  }
   0x1   :  { %v83_v0 = vld [vmem:[%s1074_s0] sm:$0xff]  ;;  %v84_v1 = vld [vmem:[%s1074_s0 + $0x8] sm:$0xff]  ;;  %v85_v3 = vld [vmem:[%s1074_s0 + $0x10] sm:$0xff]  ;;  %v194_v32 = vsel %vm192_vm2, 4294967295, %v833_v31 }
   0x2   :  { %v88_v4 = vrot.slane %v84_v1, 7  ;;  %v109_v5 = vrot.slane %v84_v1, 1  ;;  %v739_v6 = vpack.i.bf16 %v84_v1, %v83_v0  ;;  %v86_v7 = vld [vmem:[%s1074_s0 + $0x18] sm:$0xff]  ;;  %v87_v8 = vrot.slane %v83_v0, 7  ;;  %v799_v25 = vld [vmem:[%s1075_s1] sm:$0x7f]  }
   0x3   :  { %v882_v9 = vshrl.u32 %v22_v2, 7  ;;  %v89_v10 = vrot.slane %v85_v3, 7  ;;  %v110_v11 = vrot.slane %v85_v3, 1  ;;  %v108_v12 = vrot.slane %v83_v0, 1  ;;  %s834_s1 = smov 8  }
   0x4   :  { %740 = vrot.lane.b32.xlu0 %v739_v6, %s832_s26  ;;  %v90_v13 = vrot.slane %v86_v7, 7  ;;  %v111_v14 = vrot.slane %v86_v7, 1  ;;  %v744_v15 = vpack.i.bf16 %v86_v7, %v85_v3  ;;  %v195_v34 = vsel %vm193_vm3, %v194_v32, 0 }
   0x5   :  { %v24_v16 = vadd.s32 8, %v882_v9  ;;  %vm91_vm0 = vcmp.lt.s32.totalorder %v882_v9, 1  ;;  %vm112_vm1 = vcmp.lt.s32.totalorder %v882_v9, 7  ;;  %v26_v17 = vadd.s32 24, %v882_v9 }
   0x6   :  { %v114_v18 = vsel %vm112_vm1, %v109_v5, %v110_v11  ;;  %v116_v21 = vsel %vm112_vm1, %v111_v14, %v108_v12  ;;  %v92_v22 = vsel %vm91_vm0, %v89_v10, %v90_v13  ;;  %v115_v23 = vsel %vm112_vm1, %v108_v12, %v109_v5 }
   0x7   :  { %v38_v19 = vand.u32 15, %v24_v16  ;;  %v52_v20 = vand.u32 15, %v26_v17  ;;  %v93_v24 = vsel %vm91_vm0, %v88_v4, %v89_v10  ;;  %v113_v29 = vsel %vm112_vm1, %v110_v11, %v111_v14 }
   0x8   :  { %745 = vrot.lane.b32.xlu0 %v744_v15, %s832_s26  ;;  %v197_v35 = vand.u32 %v799_v25, %v195_v34  ;;  %v94_v36 = vsel %vm91_vm0, %v87_v8, %v88_v4  ;;  %v95_v38 = vsel %vm91_vm0, %v90_v13, %v87_v8 }
   0x9   :  { %vm903_vm4 = vcmp.eq.s32.totalorder %v38_v19, 15  ;;  %vm907_vm5 = vcmp.eq.s32.totalorder %v52_v20, 15 }
   0xa   :  { %v126_v28 = vsel %vm903_vm4, 0.0, %v114_v18  ;;  %v128_v30 = vsel %vm907_vm5, 0.0, %v116_v21  ;;  %697 = vmatprep.subr.bf16.mxu0 %v197_v35 }
   0xb   :  { %v749_v33 = vpack.i.bf16 %v126_v28, %v115_v23  ;;  %v754_v37 = vpack.i.bf16 %v128_v30, %v113_v29 }
   0xd   :  { %750 = vrot.lane.b32.xlu1 %v749_v33, %s834_s1 }
   0xe   :  { %10 = vsyncpa [#allocation3], 0  ;;  %698 = vmatpush3.bf16.msra.mxu0 %v197_v35  ;;  %v25_v39 = vadd.s32 16, %v882_v9  ;;  %v31_v40 = vand.u32 15, %v882_v9  ;;  %vm161_vm7 = vcmask 31744   ;;  %vm166_vm9 = vcmask 64512  }
   0xf   :  { %vm171_vm10 = vcmask 97280   ;;  %vm185_vm11 = vcmask 105472   ;;  %v800_v8 = vld [vmem:[%s1076_s2] sm:$0x7f]   ;;  %vm499_vm12 = vcmask 1040384   ;;  %s836_s13 = smov 16  }
  0x10   :  { %v45_v42 = vand.u32 15, %v25_v39  ;;  %vm925_vm6 = vcmp.eq.s32.totalorder %v31_v40, 0  ;;  %v336_v11 = vand.u32 %v800_v8, %v195_v34  ;;  %s837_s14 = smov 32   ;;  %vm447_vm13 = vcmask 130048  }
  0x11   :  { %755 = vrot.lane.b32.xlu1 %v754_v37, %s834_s1  ;;  %v104_v47 = vsel %vm925_vm6, 0.0, %v95_v38  ;;  %vm452_vm14 = vcmask 261120   ;;  %vm457_vm15 = vcmask 392192  }
  0x12   :  { %vm931_vm8 = vcmp.eq.s32.totalorder %v45_v42, 0  ;;  %703 = vmatprep.subr.bf16.mxu1 %v336_v11 }
  0x13   :  { %v106_v56 = vsel %vm931_vm8, 0.0, %v93_v24  ;;  %704 = vmatpush3.bf16.msra.mxu1 %v336_v11  ;;  %v802_v11 = vld [vmem:[%s1077_s3 + $0x8] sm:$0xff]  }
  0x76   :  { %v741_v41 = vpop.permute.xlu0 %740 }
  0x77   :  { %v743_v44 = vunpack.i.h.bf16 %v741_v41  ;;  %v742_v45 = vunpack.i.l.bf16 %v741_v41 }
  0x79   :  { %v162_v52 = vsel %vm161_vm7, %v104_v47, %v742_v45  ;;  %v163_v53 = vsel %vm161_vm7, %v94_v36, %v743_v44 }
  0x7a   :  { %v746_v46 = vpop.permute.xlu0 %745 }
  0x7b   :  { %v748_v50 = vunpack.i.h.bf16 %v746_v46  ;;  %v747_v51 = vunpack.i.l.bf16 %v746_v46 }
  0x7d   :  { %v164_v59 = vsel %vm161_vm7, %v106_v56, %v747_v51  ;;  %v165_v60 = vsel %vm161_vm7, %v92_v22, %v748_v50 }
  0x7f   :  { %v751_v49 = vpop.permute.xlu1 %750 }
  0x80   :  { %v753_v54 = vunpack.i.h.bf16 %v751_v49  ;;  %v752_v55 = vunpack.i.l.bf16 %v751_v49 }
  0x82   :  { %v167_v57 = vsel %vm166_vm9, %v162_v52, %v752_v55  ;;  %v168_v58 = vsel %vm166_vm9, %v163_v53, %v753_v54 }
  0x83   :  { %v756_v61 = vpop.permute.xlu1 %755  ;;  %v172_v62 = vsel %vm171_vm10, %v167_v57, 1.0  ;;  %v173_v63 = vsel %vm171_vm10, %v168_v58, 1.0 }
  0x84   :  { %v758_v0 = vunpack.i.h.bf16 %v756_v61  ;;  %v757_v1 = vunpack.i.l.bf16 %v756_v61  ;;  %v176_v2 = vpack.c.bf16 %v173_v63, %v172_v62 }
  0x86   :  { %v170_v3 = vsel %vm166_vm9, %v165_v60, %v758_v0  ;;  %v169_v4 = vsel %vm166_vm9, %v164_v59, %v757_v1  ;;  %699 = vmatprep.mubr.msk.bf16.mxu0 %vm185_vm11, %v176_v2 }
  0x87   :  { %v175_v5 = vsel %vm171_vm10, %v170_v3, 1.0  ;;  %v174_v6 = vsel %vm171_vm10, %v169_v4, 1.0 }
  0x88   :  { %v177_v7 = vpack.c.bf16 %v175_v5, %v174_v6 }
  0x8a   :  { %700 = vmatmul.mubr.msk.bf16.vlgmr.msra.gmra.mrb[0].mxu0 %vm185_vm11, %v177_v7 }
 0x15d   :  { %v701_v10 = vpop.f32.mrb[0].mxu0 }
 0x15e   :  { %v250_v12 = vmax.f32 %v701_v10, 0.0  ;;  %v233_v13 = vpop.f32.mrb[1].mxu0  ;;  %v801_v10 = vld [vmem:[%s1077_s3] sm:$0xff]  }
 0x15f   :  { %v248_v14 = vmax.f32 %v233_v13, 0.0  ;;  %v702_v15 = vpop.f32.mrb[2].mxu0  ;;  %709 = vmatprep.subr.bf16.mxu0 %v801_v10 }
 0x160   :  { %v251_v16 = vmax.f32 %v702_v15, 0.0  ;;  %v236_v17 = vpop.f32.mrb[3].mxu0  ;;  %v254_v18 = vrot.slane %v250_v12, 7  ;;  %v266_v22 = vrot.slane %v250_v12, 1  ;;  %710 = vmatpush3.bf16.msra.mxu0 %v801_v10 }
 0x161   :  { %v252_v19 = vrot.slane %v248_v14, 7  ;;  %v264_v20 = vrot.slane %v248_v14, 1  ;;  %v249_v21 = vmax.f32 %v236_v17, 0.0  ;;  %711 = vmatprep.subr.bf16.mxu0 %v802_v11  ;;  %v835_v17 = vmov 0  }
 0x162   :  { %v255_v23 = vrot.slane %v251_v16, 7  ;;  %v267_v24 = vrot.slane %v251_v16, 1  ;;  %v759_v25 = vpack.i.bf16 %v251_v16, %v250_v12  ;;  %v803_v12 = vld [vmem:[%s1077_s3 + $0x10] sm:$0xff]  }
 0x163   :  { %v253_v28 = vrot.slane %v249_v21, 7  ;;  %v265_v29 = vrot.slane %v249_v21, 1  ;;  %v764_v30 = vpack.i.bf16 %v249_v21, %v248_v14  ;;  %v804_v14 = vld [vmem:[%s1077_s3 + $0x18] ss:$0 sps:$4 sm:$0x11]  }
 0x164   :  { %760 = vrot.lane.b32.xlu1 %v759_v25, %s832_s26  ;;  %v268_v31 = vsel %vm112_vm1, %v266_v22, %v267_v24  ;;  %v271_v32 = vsel %vm112_vm1, %v267_v24, %v264_v20  ;;  %v256_v33 = vsel %vm91_vm0, %v254_v18, %v255_v23  ;;  %v259_v34 = vsel %vm91_vm0, %v255_v23, %v252_v19 }
 0x165   :  { %765 = vrot.lane.b32.xlu0 %v764_v30, %s832_s26  ;;  %v275_v35 = vsel %vm907_vm5, 0.0, %v271_v32  ;;  %v269_v36 = vsel %vm112_vm1, %v265_v29, %v266_v22  ;;  %v270_v37 = vsel %vm112_vm1, %v264_v20, %v265_v29  ;;  %v257_v38 = vsel %vm91_vm0, %v253_v28, %v254_v18  ;;  %712 = vmatpush3.bf16.msra.mxu0 %v802_v11 }
 0x166   :  { %v774_v39 = vpack.i.bf16 %v275_v35, %v268_v31  ;;  %v273_v40 = vsel %vm903_vm4, 0.0, %v269_v36  ;;  %v258_v41 = vsel %vm91_vm0, %v252_v19, %v253_v28  ;;  %v262_v52 = vsel %vm931_vm8, 0.0, %v257_v38  ;;  %713 = vmatprep.subr.bf16.mxu0 %v803_v12 }
 0x167   :  { %v769_v42 = vpack.i.bf16 %v273_v40, %v270_v37  ;;  %v260_v56 = vsel %vm925_vm6, 0.0, %v259_v34  ;;  %v1008_v18 = vsel %vm499_vm12, 65535, %v835_v17  ;;  %v805_v37 = vld [vmem:[%s1078_s4] sm:$0xff]  }
 0x168   :  { %775 = vrot.lane.b32.xlu1 %v774_v39, %s834_s1  ;;  %v503_v21 = vand.u32 %v804_v14, %v1008_v18  ;;  %721 = vmatprep.subr.bf16.mxu1 %v805_v37 }
 0x169   :  { %770 = vrot.lane.b32.xlu0 %v769_v42, %s834_s1  ;;  %714 = vmatpush3.bf16.msra.mxu0 %v803_v12  ;;  %v806_v12 = vld [vmem:[%s1078_s4 + $0x8] sm:$0xff]  }
 0x16a   :  { %715 = vmatprep.subr.bf16.mxu0 %v503_v21 }
 0x16d   :  { %716 = vmatpush3.bf16.msra.mxu0 %v503_v21 }
 0x1d6   :  { %v761_v44 = vpop.permute.xlu1 %760 }
 0x1d7   :  { %v766_v45 = vpop.permute.xlu0 %765  ;;  %v763_v46 = vunpack.i.h.bf16 %v761_v44  ;;  %v762_v47 = vunpack.i.l.bf16 %v761_v44 }
 0x1d8   :  { %v768_v49 = vunpack.i.h.bf16 %v766_v45  ;;  %v767_v50 = vunpack.i.l.bf16 %v766_v45 }
 0x1d9   :  { %v310_v57 = vsel %vm161_vm7, %v262_v52, %v762_v47  ;;  %v311_v58 = vsel %vm161_vm7, %v256_v33, %v763_v46 }
 0x1da   :  { %v776_v51 = vpop.permute.xlu1 %775  ;;  %v308_v63 = vsel %vm161_vm7, %v260_v56, %v767_v50  ;;  %v309_v0 = vsel %vm161_vm7, %v258_v41, %v768_v49 }
 0x1db   :  { %v778_v53 = vunpack.i.h.bf16 %v776_v51  ;;  %v777_v54 = vunpack.i.l.bf16 %v776_v51  ;;  %v771_v55 = vpop.permute.xlu0 %770 }
 0x1dc   :  { %v773_v59 = vunpack.i.h.bf16 %v771_v55  ;;  %v772_v60 = vunpack.i.l.bf16 %v771_v55 }
 0x1dd   :  { %v314_v61 = vsel %vm166_vm9, %v310_v57, %v777_v54  ;;  %v315_v62 = vsel %vm166_vm9, %v311_v58, %v778_v53 }
 0x1de   :  { %v318_v1 = vsel %vm171_vm10, %v314_v61, 1.0  ;;  %v319_v2 = vsel %vm171_vm10, %v315_v62, 1.0  ;;  %v312_v3 = vsel %vm166_vm9, %v308_v63, %v772_v60  ;;  %v313_v4 = vsel %vm166_vm9, %v309_v0, %v773_v59 }
 0x1df   :  { %v316_v5 = vsel %vm171_vm10, %v312_v3, 1.0  ;;  %v317_v6 = vsel %vm171_vm10, %v313_v4, 1.0  ;;  %v321_v7 = vpack.c.bf16 %v319_v2, %v318_v1 }
 0x1e0   :  { %v320_v8 = vpack.c.bf16 %v317_v6, %v316_v5 }
 0x1e2   :  { %705 = vmatprep.mubr.msk.bf16.mxu1 %vm185_vm11, %v320_v8 }
 0x1e3   :  { %706 = vmatmul.mubr.msk.bf16.vlgmr.msra.gmra.mrb[0].mxu1 %vm185_vm11, %v321_v7 }
 0x1e4   :  { %722 = vmatpush3.bf16.msra.mxu1 %v805_v37 }
 0x1e5   :  { %723 = vmatprep.subr.bf16.mxu1 %v806_v12 }
 0x1e8   :  { %724 = vmatpush3.bf16.msra.mxu1 %v806_v12 }
 0x2b6   :  { %v707_v13 = vpop.f32.mrb[0].mxu1 }
 0x2b7   :  { %v389_v15 = vmax.f32 %v707_v13, 0.0  ;;  %v372_v16 = vpop.f32.mrb[1].mxu1  ;;  %v807_v13 = vld [vmem:[%s1078_s4 + $0x10] ss:$0 sps:$4 sm:$0x11]   ;;  %s838_s4 = smov [#allocation2]  }
 0x2b8   :  { %v387_v19 = vmax.f32 %v372_v16, 0.0  ;;  %v708_v20 = vpop.f32.mrb[2].mxu1  ;;  %v592_v14 = vand.u32 %v807_v13, %v1008_v18  ;;  %s652_s19 = sshll.u32 %s838_s4, 4  ;;  %s653_s19 = int_to_ptr.vmem [resolvable:$true] %s652_s19 }
 0x2b9   :  { %v390_v22 = vmax.f32 %v708_v20, 0.0  ;;  %v375_v23 = vpop.f32.mrb[3].mxu1  ;;  %v393_v24 = vrot.slane %v389_v15, 7  ;;  %v405_v30 = vrot.slane %v389_v15, 1  ;;  %s808_s20 = scalar_lea.vmem %s653_s19, 512  ;;  %p813_p1 = scmp.lt.s32.totalorder %s653_s19, %s653_s19 }
 0x2ba   :  { %v391_v25 = vrot.slane %v387_v19, 7  ;;  %v403_v28 = vrot.slane %v387_v19, 1  ;;  %v388_v29 = vmax.f32 %v375_v23, 0.0  ;;  %725 = vmatprep.subr.bf16.mxu1 %v592_v14  ;;  %p809_p0 = scmp.ne.s32.totalorder %s653_s19, %s808_s20  ;;  %p814_p2 = scmp.lt.s32.totalorder %s808_s20, %s808_s20 }
 0x2bb   :  { %v394_v31 = vrot.slane %v390_v22, 7  ;;  %v406_v32 = vrot.slane %v390_v22, 1  ;;  %v779_v33 = vpack.i.bf16 %v390_v22, %v389_v15  ;;  %726 = vmatpush3.bf16.msra.mxu1 %v592_v14 }
 0x2bc   :  { %v392_v34 = vrot.slane %v388_v29, 7  ;;  %v404_v35 = vrot.slane %v388_v29, 1  ;;  %v784_v36 = vpack.i.bf16 %v388_v29, %v387_v19  ;;  %p815_p3 = por %p814_p2, %p813_p1 }
 0x2bd   :  { %780 = vrot.lane.b32.xlu1 %v779_v33, %s836_s13  ;;  %v407_v38 = vsel %vm112_vm1, %v405_v30, %v406_v32  ;;  %v410_v39 = vsel %vm112_vm1, %v406_v32, %v403_v28  ;;  %v395_v40 = vsel %vm91_vm0, %v393_v24, %v394_v31  ;;  %v398_v41 = vsel %vm91_vm0, %v394_v31, %v391_v25 }
 0x2be   :  { %785 = vrot.lane.b32.xlu0 %v784_v36, %s836_s13  ;;  %v414_v42 = vsel %vm907_vm5, 0.0, %v410_v39  ;;  %v408_v44 = vsel %vm112_vm1, %v404_v35, %v405_v30  ;;  %v409_v45 = vsel %vm112_vm1, %v403_v28, %v404_v35  ;;  %v396_v46 = vsel %vm91_vm0, %v392_v34, %v393_v24  ;;  %p816_p4 = pnand %p815_p3, %p809_p0 }
 0x2bf   :  { %v794_v47 = vpack.i.bf16 %v414_v42, %v407_v38  ;;  %v412_v49 = vsel %vm903_vm4, 0.0, %v408_v44  ;;  %v397_v27 = vsel %vm91_vm0, %v391_v25, %v392_v34  ;;  %v401_v26 = vsel %vm931_vm8, 0.0, %v396_v46 }
 0x2c0   :  { %v789_v50 = vpack.i.bf16 %v412_v49, %v409_v45  ;;  %v399_v9 = vsel %vm925_vm6, 0.0, %v398_v41  ;;  %vm492_vm0 = vcmask 400384   ;;  %vm584_vm1 = vcmask 269312  }
 0x2c1   :  { %795 = vrot.lane.b32.xlu1 %v794_v47, %s837_s14 }
 0x2c2   :  { %790 = vrot.lane.b32.xlu0 %v789_v50, %s837_s14 }
 0x32f   :  { %v781_v51 = vpop.permute.xlu1 %780 }
 0x330   :  { %v786_v52 = vpop.permute.xlu0 %785  ;;  %v783_v53 = vunpack.i.h.bf16 %v781_v51  ;;  %v782_v54 = vunpack.i.l.bf16 %v781_v51 }
 0x331   :  { %v788_v55 = vunpack.i.h.bf16 %v786_v52  ;;  %v787_v56 = vunpack.i.l.bf16 %v786_v52 }
 0x332   :  { %v450_v61 = vsel %vm447_vm13, %v401_v26, %v782_v54  ;;  %v451_v62 = vsel %vm447_vm13, %v395_v40, %v783_v53 }
 0x333   :  { %v796_v57 = vpop.permute.xlu1 %795  ;;  %v448_v1 = vsel %vm447_vm13, %v399_v9, %v787_v56  ;;  %v449_v2 = vsel %vm447_vm13, %v397_v27, %v788_v55 }
 0x334   :  { %v798_v58 = vunpack.i.h.bf16 %v796_v57  ;;  %v797_v59 = vunpack.i.l.bf16 %v796_v57  ;;  %v791_v60 = vpop.permute.xlu0 %790 }
 0x335   :  { %v793_v63 = vunpack.i.h.bf16 %v791_v60  ;;  %v792_v0 = vunpack.i.l.bf16 %v791_v60 }
 0x336   :  { %v455_v3 = vsel %vm452_vm14, %v450_v61, %v797_v59  ;;  %v456_v48 = vsel %vm452_vm14, %v451_v62, %v798_v58 }
 0x337   :  { %v460_v43 = vsel %vm457_vm15, %v455_v3, 1.0  ;;  %v461_v4 = vsel %vm457_vm15, %v456_v48, 1.0  ;;  %v453_v5 = vsel %vm452_vm14, %v448_v1, %v792_v0  ;;  %v454_v6 = vsel %vm452_vm14, %v449_v2, %v793_v63 }
 0x338   :  { %v463_v7 = vpack.c.bf16 %v461_v4, %v460_v43  ;;  %v458_v8 = vsel %vm457_vm15, %v453_v5, 1.0  ;;  %v459_v10 = vsel %vm457_vm15, %v454_v6, 1.0 }
 0x339   :  { %v462_v11 = vpack.c.bf16 %v459_v10, %v458_v8 }
 0x33b   :  { %717 = vmatprep.mubr.msk.bf16.mxu0 %vm492_vm0, %v462_v11 }
 0x33c   :  { %718 = vmatmul.mubr.msk.bf16.vlgmr.msra.gmra.mrb[4].mxu0 %vm492_vm0, %v463_v7 }
 0x40f   :  { %v719_v15 = vpop.f32.mrb[4].mxu0 }
 0x410   :  { %v556_v16 = vmax.f32 %v719_v15, 0.0  ;;  %v539_v17 = vpop.f32.mrb[5].mxu0 }
 0x411   :  { %v554_v19 = vmax.f32 %v539_v17, 0.0  ;;  %v720_v20 = vpop.f32.mrb[6].mxu0 }
 0x412   :  { %v557_v21 = vmax.f32 %v720_v20, 0.0  ;;  %v542_v22 = vpop.f32.mrb[7].mxu0  ;;  %v560_v24 = vsel %vm452_vm14, %v556_v16, 1.0 }
 0x413   :  { %v555_v23 = vmax.f32 %v542_v22, 0.0  ;;  %v558_v28 = vsel %vm452_vm14, %v554_v19, 1.0 }
 0x414   :  { %v561_v25 = vsel %vm452_vm14, %v557_v21, 1.0 }
 0x415   :  { %v563_v29 = vpack.c.bf16 %v561_v25, %v560_v24  ;;  %v559_v30 = vsel %vm452_vm14, %v555_v23, 1.0 }
 0x416   :  { %v562_v18 = vpack.c.bf16 %v559_v30, %v558_v28 }
 0x418   :  { %727 = vmatprep.mubr.msk.bf16.mxu1 %vm584_vm1, %v562_v18 }
 0x419   :  { %728 = vmatmul.mubr.msk.bf16.vlgmr.msra.gmra.mrb[4].mxu1 %vm584_vm1, %v563_v29 }
 0x4ec   :  { %v729_v31 = vpop.f32.mrb[4].mxu1 }
 0x4ed   :  { %645 = vst [vmem:[#allocation2 + $0x10] sm:$0xff] %v729_v31  ;;  %v628_v32 = vpop.f32.mrb[5].mxu1 }
 0x4ee   :  { %643 = vst [vmem:[#allocation2] sm:$0xff] %v628_v32  ;;  %v730_v33 = vpop.f32.mrb[6].mxu1 }
 0x4ef   :  { %646 = vst [vmem:[#allocation2 + $0x18] sm:$0xff] %v730_v33  ;;  %v631_v34 = vpop.f32.mrb[7].mxu1 }
 0x4f0   :  { %644 = vst [vmem:[#allocation2 + $0x8] sm:$0xff] %v631_v34 }
 0x4f1   :  { %819 = shalt.err (!%p816_p4)
}
 0x4f2   :  { %s820_s23 = scalar_lea.hbm %s1079_s5, 512 }
 0x4f3   :  { %p821_p5 = scmp.ne.s32.totalorder %s1079_s5, %s820_s23  ;;  %p824_p6 = scmp.lt.u32.totalorder %s820_s23, %s1079_s5 }
 0x4f5   :  { %p826_p7 = pnand %p824_p6, %p821_p5 }
 0x4f7   :  { %829 = shalt.err (!%p826_p7)
}
 0x4f8   :  { %s839_s27 = smov 128  }
 0x4f9   :  { %658 = dma.vmem_to_hbm [thread:$0]  %s653_s19, 512, %s1079_s5, [#allocation3], %s839_s27, %s839_s27, %s834_s1  }
 0x4fa   :  { %830 = dma.done.wait [#allocation3], 512  }
 0x4fb   :  { %831 = vsyncadd [#allocation3], 4294966784 }
 0x4fc   :  { %662 = vsyncpa [#allocation3], 1 }

</bundles_post_ra>
